<compile_context>
chip_gen: v7x
topology: tpu7x:2x2x1
jax: 0.10.0
libtpu: 0.0.40
codegen_flags: <defaults>
</compile_context>

<pallas_src>
import math

import jax
import jax.numpy as jnp
from jax.experimental import pallas as pl
from jax.experimental.pallas import tpu as pltpu


def _logsigmoid(x):
    # Numerically stable log(sigmoid(x)); exp(-|x|) in (0, 1] so log() is safe.
    return jnp.minimum(x, 0.0) - jnp.log(1.0 + jnp.exp(-jnp.abs(x)))


def mlp_kernel(x_ref, w1_ref, b1_ref, w2_ref, b2_ref, w3_ref, b3_ref, o_ref):
    x = x_ref[...]                                                    # (TB, 784)

    h = jnp.dot(x, w1_ref[...], preferred_element_type=jnp.float32)  # (TB, 10)
    h = _logsigmoid(h + b1_ref[...])

    h = jnp.dot(h, w2_ref[...], preferred_element_type=jnp.float32)  # (TB, 10)
    h = _logsigmoid(h + b2_ref[...])

    h = jnp.dot(h, w3_ref[...], preferred_element_type=jnp.float32)  # (TB, 10)
    o_ref[...] = _logsigmoid(h + b3_ref[...]).astype(o_ref.dtype)


def neural_network_forward(x, params, *, block_b=1024):
    """x: (B, 28, 28) float32. Returns (B, 10) float32 log-sigmoid outputs."""
    w1, b1, w2, b2, w3, b3 = params
    B = x.shape[0]
    D_IN, D_OUT = 28 * 28, 10
    x_flat = x.reshape(B, D_IN)  # nn.Flatten (row-major, matches PyTorch)

    # Pad the batch so every block maps cleanly onto 8-row sublanes and the
    # tile size evenly divides the (padded) batch.
    b8 = max(8, ((B + 7) // 8) * 8)
    if b8 <= block_b:
        tb = b8
        b_pad = b8
    else:
        tb = block_b
        b_pad = ((b8 + tb - 1) // tb) * tb
    if b_pad != B:
        x_flat = jnp.pad(x_flat, ((0, b_pad - B), (0, 0)))

    num_tiles = b_pad // tb

    # x / out walk the batch axis; weights & biases use constant index maps so
    # they are fetched once and stay resident in VMEM across grid steps.
    x_spec = pl.BlockSpec((tb, D_IN), lambda i: (i, 0))
    out_spec = pl.BlockSpec((tb, D_OUT), lambda i: (i, 0))

    def const(shape):
        return pl.BlockSpec(shape, lambda i, _shape=shape: tuple(0 for _ in _shape))

    out = pl.pallas_call(
        mlp_kernel,
        out_shape=jax.ShapeDtypeStruct((b_pad, D_OUT), jnp.float32),
        grid=(num_tiles,),
        in_specs=[
            x_spec,
            const((D_IN, D_OUT)), const((1, D_OUT)),
            const((D_OUT, D_OUT)), const((1, D_OUT)),
            const((D_OUT, D_OUT)), const((1, D_OUT)),
        ],
        out_specs=out_spec,
        compiler_params=pltpu.CompilerParams(
            # Batch tiles are independent -> shard across TensorCores on v7x.
            dimension_semantics=("parallel",),
        ),
    )(x_flat, w1, b1, w2, b2, w3, b3)

    return out[:B]


def init_params(key):
    """PyTorch nn.Linear default init: U(-1/sqrt(fan_in), 1/sqrt(fan_in)).
    Weights stored as (in, out) == W_torch.T."""
    ks = jax.random.split(key, 6)

    def linear(kw, kb, fan_in, fan_out):
        bound = 1.0 / math.sqrt(fan_in)
        w = jax.random.uniform(kw, (fan_in, fan_out), jnp.float32, -bound, bound)
        b = jax.random.uniform(kb, (1, fan_out), jnp.float32, -bound, bound)
        return w, b

    w1, b1 = linear(ks[0], ks[1], 28 * 28, 10)
    w2, b2 = linear(ks[2], ks[3], 10, 10)
    w3, b3 = linear(ks[4], ks[5], 10, 10)
    return (w1, b1, w2, b2, w3, b3)


def _reference(x, params):
    """Pure-JAX reference of the PyTorch forward pass."""
    w1, b1, w2, b2, w3, b3 = params
    h = x.reshape(x.shape[0], -1)
    h = jax.nn.log_sigmoid(h @ w1 + b1)
    h = jax.nn.log_sigmoid(h @ w2 + b2)
    h = jax.nn.log_sigmoid(h @ w3 + b3)
    return h


if __name__ == "__main__":
    key = jax.random.PRNGKey(0)
    k_x, k_p = jax.random.split(key)

    params = init_params(k_p)

    # Small deterministic check (single tile, batch already a multiple of 8).
    B = 8
    x = jax.random.normal(k_x, (B, 28, 28), dtype=jnp.float32)
    out = jax.block_until_ready(neural_network_forward(x, params))
    ref = _reference(x, params)
    assert out.shape == (B, 10), out.shape
    assert jnp.allclose(out, ref, atol=1e-5, rtol=1e-5), float(jnp.max(jnp.abs(out - ref)))

    # Non-multiple-of-8 batch to validate the pad/slice path.
    B2 = 12
    x2 = jax.random.normal(k_x, (B2, 28, 28), dtype=jnp.float32)
    out2 = jax.block_until_ready(neural_network_forward(x2, params))
    ref2 = _reference(x2, params)
    assert out2.shape == (B2, 10), out2.shape
    assert jnp.allclose(out2, ref2, atol=1e-5, rtol=1e-5), float(jnp.max(jnp.abs(out2 - ref2)))

    print("KERNEL_OK")
</pallas_src>

<mosaic_0001>
module attributes {stable_mosaic.version = 11 : i64} {
  func.func @mlp_kernel(%arg0: i32, %arg1: memref<8x784xf32, #tpu.memory_space<vmem>>, %arg2: memref<784x10xf32, #tpu.memory_space<vmem>>, %arg3: memref<1x10xf32, #tpu.memory_space<vmem>>, %arg4: memref<10x10xf32, #tpu.memory_space<vmem>>, %arg5: memref<1x10xf32, #tpu.memory_space<vmem>>, %arg6: memref<10x10xf32, #tpu.memory_space<vmem>>, %arg7: memref<1x10xf32, #tpu.memory_space<vmem>>, %arg8: memref<8x10xf32, #tpu.memory_space<vmem>>) attributes {dimension_semantics = [#tpu.dimension_semantics<parallel>], iteration_bounds = array<i64: 1>, scalar_prefetch = 0 : i64, scratch_operands = 0 : i64, tpu.core_type = #tpu.core_type<tc>, window_params = [{transform_indices = @transform_0, window_bounds = array<i64: 8, 784>}, {pipeline_mode = #tpu.pipeline_mode<synchronous>, transform_indices = @transform_1, window_bounds = array<i64: 784, 10>}, {pipeline_mode = #tpu.pipeline_mode<synchronous>, transform_indices = @transform_2, window_bounds = array<i64: 1, 10>}, {pipeline_mode = #tpu.pipeline_mode<synchronous>, transform_indices = @transform_3, window_bounds = array<i64: 10, 10>}, {pipeline_mode = #tpu.pipeline_mode<synchronous>, transform_indices = @transform_4, window_bounds = array<i64: 1, 10>}, {pipeline_mode = #tpu.pipeline_mode<synchronous>, transform_indices = @transform_5, window_bounds = array<i64: 10, 10>}, {pipeline_mode = #tpu.pipeline_mode<synchronous>, transform_indices = @transform_6, window_bounds = array<i64: 1, 10>}, {transform_indices = @transform_7, window_bounds = array<i64: 8, 10>}]} {
    %c0 = arith.constant 0 : index
    %c0_0 = arith.constant 0 : index
    %0 = vector.load %arg1[%c0, %c0_0] : memref<8x784xf32, #tpu.memory_space<vmem>>, vector<8x784xf32>
    %c0_1 = arith.constant 0 : index
    %c0_2 = arith.constant 0 : index
    %1 = vector.load %arg2[%c0_1, %c0_2] : memref<784x10xf32, #tpu.memory_space<vmem>>, vector<784x10xf32>
    %cst = arith.constant dense<0.000000e+00> : vector<8x10xf32>
    %2 = tpu.matmul %0, %1, %cst {dimension_numbers = #tpu.dot_dimension_numbers<[1], [0], [0], [1], [0, 0, 1, 1], [], []>} : vector<8x784xf32>, vector<784x10xf32>, vector<8x10xf32> -> vector<8x10xf32>
    %c0_3 = arith.constant 0 : index
    %c0_4 = arith.constant 0 : index
    %3 = vector.load %arg3[%c0_3, %c0_4] : memref<1x10xf32, #tpu.memory_space<vmem>>, vector<1x10xf32>
    %4 = vector.broadcast %3 : vector<1x10xf32> to vector<8x10xf32>
    %5 = arith.addf %2, %4 : vector<8x10xf32>
    %cst_5 = arith.constant 0.000000e+00 : f32
    %6 = vector.broadcast %cst_5 : f32 to vector<8x10xf32>
    %7 = arith.minimumf %5, %6 : vector<8x10xf32>
    %8 = math.absf %5 : vector<8x10xf32>
    %cst_6 = arith.constant 0.000000e+00 : f32
    %9 = vector.broadcast %cst_6 : f32 to vector<8x10xf32>
    %10 = arith.subf %9, %8 : vector<8x10xf32>
    %11 = math.exp %10 : vector<8x10xf32>
    %cst_7 = arith.constant 1.000000e+00 : f32
    %12 = vector.broadcast %cst_7 : f32 to vector<8x10xf32>
    %13 = arith.addf %12, %11 : vector<8x10xf32>
    %14 = math.log %13 : vector<8x10xf32>
    %15 = arith.subf %7, %14 : vector<8x10xf32>
    %c0_8 = arith.constant 0 : index
    %c0_9 = arith.constant 0 : index
    %16 = vector.load %arg4[%c0_8, %c0_9] : memref<10x10xf32, #tpu.memory_space<vmem>>, vector<10x10xf32>
    %cst_10 = arith.constant dense<0.000000e+00> : vector<8x10xf32>
    %17 = tpu.matmul %15, %16, %cst_10 {dimension_numbers = #tpu.dot_dimension_numbers<[1], [0], [0], [1], [0, 0, 1, 1], [], []>} : vector<8x10xf32>, vector<10x10xf32>, vector<8x10xf32> -> vector<8x10xf32>
    %c0_11 = arith.constant 0 : index
    %c0_12 = arith.constant 0 : index
    %18 = vector.load %arg5[%c0_11, %c0_12] : memref<1x10xf32, #tpu.memory_space<vmem>>, vector<1x10xf32>
    %19 = vector.broadcast %18 : vector<1x10xf32> to vector<8x10xf32>
    %20 = arith.addf %17, %19 : vector<8x10xf32>
    %cst_13 = arith.constant 0.000000e+00 : f32
    %21 = vector.broadcast %cst_13 : f32 to vector<8x10xf32>
    %22 = arith.minimumf %20, %21 : vector<8x10xf32>
    %23 = math.absf %20 : vector<8x10xf32>
    %cst_14 = arith.constant 0.000000e+00 : f32
    %24 = vector.broadcast %cst_14 : f32 to vector<8x10xf32>
    %25 = arith.subf %24, %23 : vector<8x10xf32>
    %26 = math.exp %25 : vector<8x10xf32>
    %cst_15 = arith.constant 1.000000e+00 : f32
    %27 = vector.broadcast %cst_15 : f32 to vector<8x10xf32>
    %28 = arith.addf %27, %26 : vector<8x10xf32>
    %29 = math.log %28 : vector<8x10xf32>
    %30 = arith.subf %22, %29 : vector<8x10xf32>
    %c0_16 = arith.constant 0 : index
    %c0_17 = arith.constant 0 : index
    %31 = vector.load %arg6[%c0_16, %c0_17] : memref<10x10xf32, #tpu.memory_space<vmem>>, vector<10x10xf32>
    %cst_18 = arith.constant dense<0.000000e+00> : vector<8x10xf32>
    %32 = tpu.matmul %30, %31, %cst_18 {dimension_numbers = #tpu.dot_dimension_numbers<[1], [0], [0], [1], [0, 0, 1, 1], [], []>} : vector<8x10xf32>, vector<10x10xf32>, vector<8x10xf32> -> vector<8x10xf32>
    %c0_19 = arith.constant 0 : index
    %c0_20 = arith.constant 0 : index
    %33 = vector.load %arg7[%c0_19, %c0_20] : memref<1x10xf32, #tpu.memory_space<vmem>>, vector<1x10xf32>
    %34 = vector.broadcast %33 : vector<1x10xf32> to vector<8x10xf32>
    %35 = arith.addf %32, %34 : vector<8x10xf32>
    %cst_21 = arith.constant 0.000000e+00 : f32
    %36 = vector.broadcast %cst_21 : f32 to vector<8x10xf32>
    %37 = arith.minimumf %35, %36 : vector<8x10xf32>
    %38 = math.absf %35 : vector<8x10xf32>
    %cst_22 = arith.constant 0.000000e+00 : f32
    %39 = vector.broadcast %cst_22 : f32 to vector<8x10xf32>
    %40 = arith.subf %39, %38 : vector<8x10xf32>
    %41 = math.exp %40 : vector<8x10xf32>
    %cst_23 = arith.constant 1.000000e+00 : f32
    %42 = vector.broadcast %cst_23 : f32 to vector<8x10xf32>
    %43 = arith.addf %42, %41 : vector<8x10xf32>
    %44 = math.log %43 : vector<8x10xf32>
    %45 = arith.subf %37, %44 : vector<8x10xf32>
    %c0_24 = arith.constant 0 : index
    %c0_25 = arith.constant 0 : index
    %46 = vector.load %arg8[%c0_24, %c0_25] : memref<8x10xf32, #tpu.memory_space<vmem>>, vector<8x10xf32>
    tpu.vector_store %arg8[%c0_24, %c0_25], %45 {strides = array<i32>} : memref<8x10xf32, #tpu.memory_space<vmem>>, vector<8x10xf32>,
    return
  }
  func.func @transform_0(%arg0: i32) -> (i32, i32) {
    %c0_i32 = arith.constant 0 : i32
    %c0_i32_0 = arith.constant 0 : i32
    return %arg0, %c0_i32 : i32, i32
  }
  func.func @transform_1(%arg0: i32) -> (i32, i32) {
    %c0_i32 = arith.constant 0 : i32
    %c0_i32_0 = arith.constant 0 : i32
    %c0_i32_1 = arith.constant 0 : i32
    return %c0_i32, %c0_i32_0 : i32, i32
  }
  func.func @transform_2(%arg0: i32) -> (i32, i32) {
    %c0_i32 = arith.constant 0 : i32
    %c0_i32_0 = arith.constant 0 : i32
    %c0_i32_1 = arith.constant 0 : i32
    return %c0_i32, %c0_i32_0 : i32, i32
  }
  func.func @transform_3(%arg0: i32) -> (i32, i32) {
    %c0_i32 = arith.constant 0 : i32
    %c0_i32_0 = arith.constant 0 : i32
    %c0_i32_1 = arith.constant 0 : i32
    return %c0_i32, %c0_i32_0 : i32, i32
  }
  func.func @transform_4(%arg0: i32) -> (i32, i32) {
    %c0_i32 = arith.constant 0 : i32
    %c0_i32_0 = arith.constant 0 : i32
    %c0_i32_1 = arith.constant 0 : i32
    return %c0_i32, %c0_i32_0 : i32, i32
  }
  func.func @transform_5(%arg0: i32) -> (i32, i32) {
    %c0_i32 = arith.constant 0 : i32
    %c0_i32_0 = arith.constant 0 : i32
    %c0_i32_1 = arith.constant 0 : i32
    return %c0_i32, %c0_i32_0 : i32, i32
  }
  func.func @transform_6(%arg0: i32) -> (i32, i32) {
    %c0_i32 = arith.constant 0 : i32
    %c0_i32_0 = arith.constant 0 : i32
    %c0_i32_1 = arith.constant 0 : i32
    return %c0_i32, %c0_i32_0 : i32, i32
  }
  func.func @transform_7(%arg0: i32) -> (i32, i32) {
    %c0_i32 = arith.constant 0 : i32
    %c0_i32_0 = arith.constant 0 : i32
    return %arg0, %c0_i32 : i32, i32
  }
}

</mosaic_0001>

<bundles_post_ra>
// kernel: tpu_custom_call.1
= control target key start
LH: loop header
LB: loop body
LE: loop exit
PB: predicated region body
PF: predicated region fallthrough
CT: control target
= control target key end

     0   :  { %s1341_s0 = inlined_call_operand.vmem [shape: f32[8,784], index: 0, kind: input, shape index: {}]   ;;  %s1342_s1 = inlined_call_operand.vmem [shape: f32[784,10], index: 1, kind: input, shape index: {}]   ;;  %s1343_s2 = inlined_call_operand.vmem [shape: f32[1,10], index: 2, kind: input, shape index: {}]   ;;  %s1344_s3 = inlined_call_operand.vmem [shape: f32[10,10], index: 3, kind: input, shape index: {}]   ;;  %s1345_s4 = inlined_call_operand.vmem [shape: f32[1,10], index: 4, kind: input, shape index: {}]   ;;  %s1346_s5 = inlined_call_operand.vmem [shape: f32[10,10], index: 5, kind: input, shape index: {}]   ;;  %s1347_s6 = inlined_call_operand.vmem [shape: f32[1,10], index: 6, kind: input, shape index: {}]   ;;  %s1348_s7 = inlined_call_operand.hbm [shape: f32[8,10], index: 7, kind: output, shape index: {}]  }
   0x1   :  { %v50_v0 = vld [vmem:[%s1342_s1 + $0x80] sm:$0xff]  ;;  %v51_v1 = vld [vmem:[%s1342_s1 + $0x88] sm:$0xff]  ;;  %v52_v11 = vld [vmem:[%s1342_s1 + $0x90] sm:$0xff] }
   0x2   :  { %v34_v2 = vld [vmem:[%s1342_s1] sm:$0xff]  ;;  %v780_v3 = vpack.c.bf16 %v51_v1, %v50_v0  ;;  %v35_v4 = vld [vmem:[%s1342_s1 + $0x8] sm:$0xff]  ;;  %v53_v13 = vld [vmem:[%s1342_s1 + $0x98] sm:$0xff] }
   0x3   :  { %v82_v5 = vld [vmem:[%s1342_s1 + $0x180] sm:$0xff]  ;;  %v83_v6 = vld [vmem:[%s1342_s1 + $0x188] sm:$0xff]  ;;  %v782_v7 = vpack.c.bf16 %v35_v4, %v34_v2  ;;  %v36_v14 = vld [vmem:[%s1342_s1 + $0x10] sm:$0xff]  ;;  %v784_v16 = vpack.c.bf16 %v53_v13, %v52_v11 }
   0x4   :  { %v812_v8 = vpack.c.bf16 %v83_v6, %v82_v5  ;;  %v66_v9 = vld [vmem:[%s1342_s1 + $0x100] sm:$0xff]  ;;  %v67_v10 = vld [vmem:[%s1342_s1 + $0x108] sm:$0xff]  ;;  %781 = vmatprep.subr.bf16.mxu0 %v780_v3  ;;  %v37_v15 = vld [vmem:[%s1342_s1 + $0x18] sm:$0xff] }
   0x5   :  { %v814_v12 = vpack.c.bf16 %v67_v10, %v66_v9  ;;  %783 = vmatpush3.bf16.msra.mxu0 %v782_v7  ;;  %v786_v17 = vpack.c.bf16 %v37_v15, %v36_v14  ;;  %v84_v18 = vld [vmem:[%s1342_s1 + $0x190] sm:$0xff]  ;;  %v85_v19 = vld [vmem:[%s1342_s1 + $0x198] sm:$0xff]  ;;  %v54_v23 = vld [vmem:[%s1342_s1 + $0xa0] sm:$0xff] }
   0x6   :  { %813 = vmatprep.subr.bf16.mxu1 %v812_v8  ;;  %v68_v20 = vld [vmem:[%s1342_s1 + $0x110] sm:$0xff]  ;;  %v816_v21 = vpack.c.bf16 %v85_v19, %v84_v18  ;;  %v69_v22 = vld [vmem:[%s1342_s1 + $0x118] sm:$0xff]  ;;  %v55_v24 = vld [vmem:[%s1342_s1 + $0xa8] sm:$0xff]  ;;  %785 = vmatprep.subr.bf16.mxu0 %v784_v16 }
   0x7   :  { %815 = vmatpush3.bf16.msra.mxu1 %v814_v12  ;;  %v818_v25 = vpack.c.bf16 %v69_v22, %v68_v20  ;;  %v788_v26 = vpack.c.bf16 %v55_v24, %v54_v23  ;;  %v38_v27 = vld [vmem:[%s1342_s1 + $0x20] sm:$0xff]  ;;  %v39_v28 = vld [vmem:[%s1342_s1 + $0x28] sm:$0xff]  ;;  %v56_v35 = vld [vmem:[%s1342_s1 + $0xb0] sm:$0xff] }
   0x8   :  { %v86_v29 = vld [vmem:[%s1342_s1 + $0x1a0] sm:$0xff]  ;;  %817 = vmatprep.subr.bf16.mxu1 %v816_v21  ;;  %v87_v30 = vld [vmem:[%s1342_s1 + $0x1a8] sm:$0xff]  ;;  %v790_v33 = vpack.c.bf16 %v39_v28, %v38_v27  ;;  %v57_v36 = vld [vmem:[%s1342_s1 + $0xb8] sm:$0xff] }
   0x9   :  { %v70_v31 = vld [vmem:[%s1342_s1 + $0x120] sm:$0xff]  ;;  %v71_v32 = vld [vmem:[%s1342_s1 + $0x128] sm:$0xff]  ;;  %787 = vmatpush3.bf16.msra.mxu0 %v786_v17  ;;  %v820_v34 = vpack.c.bf16 %v87_v30, %v86_v29  ;;  %v40_v37 = vld [vmem:[%s1342_s1 + $0x30] sm:$0xff]  ;;  %v792_v39 = vpack.c.bf16 %v57_v36, %v56_v35 }
   0xa   :  { %789 = vmatprep.subr.bf16.mxu0 %v788_v26  ;;  %v822_v38 = vpack.c.bf16 %v71_v32, %v70_v31  ;;  %v41_v40 = vld [vmem:[%s1342_s1 + $0x38] sm:$0xff]  ;;  %v88_v41 = vld [vmem:[%s1342_s1 + $0x1b0] sm:$0xff]  ;;  %v58_v46 = vld [vmem:[%s1342_s1 + $0xc0] sm:$0xff] }
   0xb   :  { %819 = vmatpush3.bf16.msra.mxu1 %v818_v25  ;;  %v89_v42 = vld [vmem:[%s1342_s1 + $0x1b8] sm:$0xff]  ;;  %v72_v44 = vld [vmem:[%s1342_s1 + $0x130] sm:$0xff]  ;;  %v59_v47 = vld [vmem:[%s1342_s1 + $0xc8] sm:$0xff]  ;;  %v794_v48 = vpack.c.bf16 %v41_v40, %v40_v37 }
   0xc   :  { %821 = vmatprep.subr.bf16.mxu1 %v820_v34  ;;  %v824_v43 = vpack.c.bf16 %v89_v42, %v88_v41  ;;  %v73_v45 = vld [vmem:[%s1342_s1 + $0x138] sm:$0xff]  ;;  %v90_v49 = vld [vmem:[%s1342_s1 + $0x1c0] sm:$0xff]  ;;  %v91_v50 = vld [vmem:[%s1342_s1 + $0x1c8] sm:$0xff]  ;;  %v796_v52 = vpack.c.bf16 %v59_v47, %v58_v46 }
   0xd   :  { %791 = vmatpush3.bf16.msra.mxu0 %v790_v33  ;;  %v826_v51 = vpack.c.bf16 %v73_v45, %v72_v44  ;;  %v42_v53 = vld [vmem:[%s1342_s1 + $0x40] sm:$0xff]  ;;  %v43_v54 = vld [vmem:[%s1342_s1 + $0x48] sm:$0xff]  ;;  %v828_v56 = vpack.c.bf16 %v91_v50, %v90_v49  ;;  %v60_v58 = vld [vmem:[%s1342_s1 + $0xd0] sm:$0xff]  ;;  %v928_v50 = vmov 0.0|0.0  }
   0xe   :  { %793 = vmatprep.subr.bf16.mxu0 %v792_v39  ;;  %v74_v55 = vld [vmem:[%s1342_s1 + $0x140] sm:$0xff]  ;;  %v75_v57 = vld [vmem:[%s1342_s1 + $0x148] sm:$0xff]  ;;  %v61_v59 = vld [vmem:[%s1342_s1 + $0xd8] sm:$0xff]  ;;  %v798_v62 = vpack.c.bf16 %v43_v54, %v42_v53 }
   0xf   :  { %823 = vmatpush3.bf16.msra.mxu1 %v822_v38  ;;  %v92_v60 = vld [vmem:[%s1342_s1 + $0x1d0] sm:$0xff]  ;;  %v93_v61 = vld [vmem:[%s1342_s1 + $0x1d8] sm:$0xff]  ;;  %v830_v63 = vpack.c.bf16 %v75_v57, %v74_v55  ;;  %v800_v0 = vpack.c.bf16 %v61_v59, %v60_v58  ;;  %v62_v6 = vld [vmem:[%s1342_s1 + $0xe0] sm:$0xff] }
  0x10   :  { %825 = vmatprep.subr.bf16.mxu1 %v824_v43  ;;  %v44_v1 = vld [vmem:[%s1342_s1 + $0x50] sm:$0xff]  ;;  %v45_v2 = vld [vmem:[%s1342_s1 + $0x58] sm:$0xff]  ;;  %v832_v4 = vpack.c.bf16 %v93_v61, %v92_v60  ;;  %v63_v7 = vld [vmem:[%s1342_s1 + $0xe8] sm:$0xff] }
  0x11   :  { %795 = vmatpush3.bf16.msra.mxu0 %v794_v48  ;;  %v76_v3 = vld [vmem:[%s1342_s1 + $0x150] sm:$0xff]  ;;  %v77_v5 = vld [vmem:[%s1342_s1 + $0x158] sm:$0xff]  ;;  %v94_v8 = vld [vmem:[%s1342_s1 + $0x1e0] sm:$0xff]  ;;  %v802_v10 = vpack.c.bf16 %v45_v2, %v44_v1  ;;  %v804_v14 = vpack.c.bf16 %v63_v7, %v62_v6 }
  0x12   :  { %797 = vmatprep.subr.bf16.mxu0 %v796_v52  ;;  %v95_v9 = vld [vmem:[%s1342_s1 + $0x1e8] sm:$0xff]  ;;  %v46_v11 = vld [vmem:[%s1342_s1 + $0x60] sm:$0xff]  ;;  %v834_v13 = vpack.c.bf16 %v77_v5, %v76_v3  ;;  %v64_v19 = vld [vmem:[%s1342_s1 + $0xf0] sm:$0xff] }
  0x13   :  { %827 = vmatpush3.bf16.msra.mxu1 %v826_v51  ;;  %v28_v12 = vld [vmem:[%s1341_s0 + $0x8] sm:$0xff]  ;;  %v78_v16 = vld [vmem:[%s1342_s1 + $0x160] sm:$0xff]  ;;  %v836_v18 = vpack.c.bf16 %v95_v9, %v94_v8  ;;  %v65_v20 = vld [vmem:[%s1342_s1 + $0xf8] sm:$0xff] }
  0x14   :  { %829 = vmatprep.subr.bf16.mxu1 %v828_v56  ;;  %v47_v15 = vld [vmem:[%s1342_s1 + $0x68] sm:$0xff]  ;;  %207 = vmatprep.mubr.f32.mxu0 %v28_v12  ;;  %v30_v21 = vld [vmem:[%s1341_s0 + $0x18] sm:$0xff]  ;;  %v96_v22 = vld [vmem:[%s1342_s1 + $0x1f0] sm:$0xff]  ;;  %v808_v26 = vpack.c.bf16 %v65_v20, %v64_v19 }
  0x15   :  { %799 = vmatpush3.bf16.msra.mxu0 %v798_v62  ;;  %v79_v17 = vld [vmem:[%s1342_s1 + $0x168] sm:$0xff]  ;;  %v97_v23 = vld [vmem:[%s1342_s1 + $0x1f8] sm:$0xff]  ;;  %277 = vmatprep.mubr.f32.mxu1 %v30_v21  ;;  %v806_v24 = vpack.c.bf16 %v47_v15, %v46_v11  ;;  %v48_v27 = vld [vmem:[%s1342_s1 + $0x70] sm:$0xff] }
  0x16   :  { %801 = vmatprep.subr.bf16.mxu0 %v800_v0  ;;  %v838_v25 = vpack.c.bf16 %v79_v17, %v78_v16  ;;  %v49_v28 = vld [vmem:[%s1342_s1 + $0x78] sm:$0xff]  ;;  %v80_v29 = vld [vmem:[%s1342_s1 + $0x170] sm:$0xff]  ;;  %v840_v30 = vpack.c.bf16 %v97_v23, %v96_v22  ;;  %v114_v32 = vld [vmem:[%s1342_s1 + $0x280] sm:$0xff] }
  0x17   :  { %831 = vmatpush3.bf16.msra.mxu1 %v830_v63  ;;  %v81_v31 = vld [vmem:[%s1342_s1 + $0x178] sm:$0xff]  ;;  %v115_v33 = vld [vmem:[%s1342_s1 + $0x288] sm:$0xff]  ;;  %v810_v34 = vpack.c.bf16 %v49_v28, %v48_v27  ;;  %v98_v37 = vld [vmem:[%s1342_s1 + $0x200] sm:$0xff] }
  0x18   :  { %833 = vmatprep.subr.bf16.mxu1 %v832_v4  ;;  %v842_v35 = vpack.c.bf16 %v81_v31, %v80_v29  ;;  %v844_v36 = vpack.c.bf16 %v115_v33, %v114_v32  ;;  %v99_v38 = vld [vmem:[%s1342_s1 + $0x208] sm:$0xff]  ;;  %v116_v39 = vld [vmem:[%s1342_s1 + $0x290] sm:$0xff]  ;;  %v117_v40 = vld [vmem:[%s1342_s1 + $0x298] sm:$0xff] }
  0x19   :  { %803 = vmatpush3.bf16.msra.mxu0 %v802_v10  ;;  %v27_v41 = vld [vmem:[%s1341_s0] sm:$0xff]  ;;  %v846_v42 = vpack.c.bf16 %v99_v38, %v98_v37  ;;  %v29_v43 = vld [vmem:[%s1341_s0 + $0x10] sm:$0xff]  ;;  %v848_v45 = vpack.c.bf16 %v117_v40, %v116_v39  ;;  %v101_v46 = vld [vmem:[%s1342_s1 + $0x218] sm:$0xff] }
  0x1a   :  { %805 = vmatprep.subr.bf16.mxu0 %v804_v14  ;;  %v100_v44 = vld [vmem:[%s1342_s1 + $0x210] sm:$0xff]  ;;  %v118_v47 = vld [vmem:[%s1342_s1 + $0x2a0] sm:$0xff]  ;;  %v119_v48 = vld [vmem:[%s1342_s1 + $0x2a8] sm:$0xff] }
  0x1b   :  { %835 = vmatpush3.bf16.msra.mxu1 %v834_v13  ;;  %v32_v49 = vld [vmem:[%s1341_s0 + $0x28] sm:$0xff]  ;;  %v130_v51 = vld [vmem:[%s1342_s1 + $0x300] sm:$0xff] }
  0x1c   :  { %837 = vmatprep.subr.bf16.mxu1 %v836_v18  ;;  %v131_v52 = vld [vmem:[%s1342_s1 + $0x308] sm:$0xff] }
  0x1d   :  { %807 = vmatpush3.bf16.msra.mxu0 %v806_v24  ;;  %v877_v53 = vpack.c.bf16 %v131_v52, %v130_v51 }
  0x1e   :  { %809 = vmatprep.subr.bf16.mxu0 %v808_v26 }
  0x1f   :  { %839 = vmatpush3.bf16.msra.mxu1 %v838_v25 }
  0x20   :  { %841 = vmatprep.subr.bf16.mxu1 %v840_v30 }
  0x21   :  { %811 = vmatpush3.bf16.msra.mxu0 %v810_v34 }
  0x22   :  { %845 = vmatprep.subr.bf16.mxu0 %v844_v36 }
  0x23   :  { %843 = vmatpush3.bf16.msra.mxu1 %v842_v35 }
  0x24   :  { %876 = vmatprep.subr.bf16.mxu1 %v928_v50  ;;  %208 = vmatmul.mubr.f32.vlgmr.msra.gmra.mrb[0].mxu0 %v27_v41 }
  0x25   :  { %12 = vsyncpa [#allocation3], 0  ;;  %847 = vmatpush3.bf16.msra.mxu0 %v846_v42  ;;  %v850_v54 = vpack.c.bf16 %v101_v46, %v100_v44  ;;  %v852_v55 = vpack.c.bf16 %v119_v48, %v118_v47  ;;  %v102_v56 = vld [vmem:[%s1342_s1 + $0x220] sm:$0xff]  ;;  %v103_v57 = vld [vmem:[%s1342_s1 + $0x228] sm:$0xff]  ;;  %347 = vmatprep.mubr.f32.mxu0 %v32_v49  ;;  %vm929_vm0 = vmmov 0   ;;  %v930_v60 = vmov 0.0  }
  0x26   :  { %278 = vmatmul.mubr.f32.vlgmr.msra.gmra.mrb[0].mxu1 %v29_v43  ;;  %849 = vmatprep.subr.bf16.mxu0 %v848_v45  ;;  %v120_v58 = vld [vmem:[%s1342_s1 + $0x2b0] sm:$0xff]  ;;  %v121_v59 = vld [vmem:[%s1342_s1 + $0x2b8] sm:$0xff]  ;;  %vm139_vm1 = vcmask 130048   ;;  %v854_v62 = vpack.c.bf16 %v103_v57, %v102_v56  ;;  %v122_v2 = vld [vmem:[%s1342_s1 + $0x2c0] sm:$0xff]  ;;  %vm445_vm2 = vcmask 1041408   ;;  %vm931_vm3 = vmmov 1  }
  0x27   :  { %878 = vmatpush3.bf16.msra.mxu1 %v877_v53  ;;  %763 = vmatprep.mubr.msk.f32.mxu1 %vm929_vm0, %v930_v60  ;;  %v33_v61 = vld [vmem:[%s1341_s0 + $0x30] sm:$0xff]  ;;  %v856_v63 = vpack.c.bf16 %v121_v59, %v120_v58  ;;  %v105_v1 = vld [vmem:[%s1342_s1 + $0x238] sm:$0xff]  ;;  %v123_v3 = vld [vmem:[%s1342_s1 + $0x2c8] sm:$0xff]  ;;  %vm441_vm5 = vcmask 80896  }
  0x28   :  { %879 = vmatprep.subr.bf16.mxu1 %v928_v50  ;;  %v104_v0 = vld [vmem:[%s1342_s1 + $0x230] sm:$0xff]  ;;  %v860_v5 = vpack.c.bf16 %v123_v3, %v122_v2  ;;  %v106_v6 = vld [vmem:[%s1342_s1 + $0x240] sm:$0xff]  ;;  %v107_v7 = vld [vmem:[%s1342_s1 + $0x248] sm:$0xff] }
  0x29   :  { %851 = vmatpush3.bf16.msra.mxu0 %v850_v54  ;;  %v858_v4 = vpack.c.bf16 %v105_v1, %v104_v0  ;;  %v124_v8 = vld [vmem:[%s1342_s1 + $0x2d0] sm:$0xff]  ;;  %v125_v9 = vld [vmem:[%s1342_s1 + $0x2d8] sm:$0xff]  ;;  %v862_v10 = vpack.c.bf16 %v107_v7, %v106_v6  ;;  %v126_v14 = vld [vmem:[%s1342_s1 + $0x2e0] sm:$0xff] }
  0x2a   :  { %853 = vmatprep.subr.bf16.mxu0 %v852_v55  ;;  %764 = vmatmul.mubr.msk.f32.vlgmr.msra.gmra.mrb[2].mxu1 %vm139_vm1, %v33_v61  ;;  %v864_v11 = vpack.c.bf16 %v125_v9, %v124_v8  ;;  %v108_v12 = vld [vmem:[%s1342_s1 + $0x250] sm:$0xff]  ;;  %v109_v13 = vld [vmem:[%s1342_s1 + $0x258] sm:$0xff]  ;;  %v127_v15 = vld [vmem:[%s1342_s1 + $0x2e8] sm:$0xff] }
  0x2b   :  { %770 = vmatprep.mubr.msk.f32.mxu1 %vm929_vm0, %v930_v60  ;;  %v866_v16 = vpack.c.bf16 %v109_v13, %v108_v12  ;;  %v868_v17 = vpack.c.bf16 %v127_v15, %v126_v14  ;;  %v110_v18 = vld [vmem:[%s1342_s1 + $0x260] sm:$0xff]  ;;  %v111_v19 = vld [vmem:[%s1342_s1 + $0x268] sm:$0xff]  ;;  %v128_v20 = vld [vmem:[%s1342_s1 + $0x2f0] sm:$0xff] }
  0x2c   :  { %v129_v21 = vld [vmem:[%s1342_s1 + $0x2f8] sm:$0xff]  ;;  %v870_v22 = vpack.c.bf16 %v111_v19, %v110_v18  ;;  %v112_v24 = vld [vmem:[%s1342_s1 + $0x270] sm:$0xff]  ;;  %v31_v27 = vld [vmem:[%s1341_s0 + $0x20] sm:$0xff] }
  0x2d   :  { %855 = vmatpush3.bf16.msra.mxu0 %v854_v62  ;;  %v872_v23 = vpack.c.bf16 %v129_v21, %v128_v20  ;;  %v113_v25 = vld [vmem:[%s1342_s1 + $0x278] sm:$0xff]  ;;  %v432_v28 = vld [vmem:[%s1344_s3] sm:$0xff]  ;;  %v433_v29 = vld [vmem:[%s1344_s3 + $0x8] sm:$0x3] }
  0x2e   :  { %857 = vmatprep.subr.bf16.mxu0 %v856_v63  ;;  %v874_v26 = vpack.c.bf16 %v113_v25, %v112_v24  ;;  %v880_v30 = vpack.c.bf16 %v433_v29, %v432_v28  ;;  %vm1300_vm4 = vmpackc.low %vm445_vm2, %vm931_vm3  ;;  %v637_v33 = vld [vmem:[%s1343_s2] ss:$0 sm:$0xff]  ;;  %v529_v58 = vld [vmem:[%s1346_s5 + $0x8] sm:$0x3] }
  0x2f   :  { %v528_v57 = vld [vmem:[%s1346_s5] sm:$0xff] }
  0x30   :  { %882 = vmatpush3.bf16.msk.msra.mxu1 %vm1300_vm4, %v880_v30  ;;  %v884_v59 = vpack.c.bf16 %v529_v58, %v528_v57  ;;  %v639_v61 = vld [vmem:[%s1345_s4] ss:$0 sm:$0xff]  ;;  %s932_s4 = smov [#allocation2]  }
  0x31   :  { %859 = vmatpush3.bf16.msra.mxu0 %v858_v4  ;;  %883 = vmatprep.subr.bf16.mxu1 %v928_v50  ;;  %v642_v9 = vld [vmem:[%s1347_s6] ss:$0 sm:$0xff]  ;;  %s629_s13 = sshll.u32 %s932_s4, 4  ;;  %s630_s13 = int_to_ptr.vmem [resolvable:$true] %s629_s13 }
  0x32   :  { %861 = vmatprep.subr.bf16.mxu0 %v860_v5  ;;  %s904_s6 = scalar_lea.vmem %s630_s13, 128  ;;  %p909_p1 = scmp.lt.s32.totalorder %s630_s13, %s630_s13 }
  0x33   :  { %p905_p0 = scmp.ne.s32.totalorder %s630_s13, %s904_s6  ;;  %p910_p2 = scmp.lt.s32.totalorder %s904_s6, %s904_s6 }
  0x35   :  { %863 = vmatpush3.bf16.msra.mxu0 %v862_v10  ;;  %p911_p3 = por %p910_p2, %p909_p1 }
  0x36   :  { %865 = vmatprep.subr.bf16.mxu0 %v864_v11 }
  0x37   :  { %p912_p4 = pnand %p911_p3, %p905_p0 }
  0x39   :  { %867 = vmatpush3.bf16.msra.mxu0 %v866_v16 }
  0x3a   :  { %869 = vmatprep.subr.bf16.mxu0 %v868_v17 }
  0x3d   :  { %871 = vmatpush3.bf16.msra.mxu0 %v870_v22 }
  0x3e   :  { %873 = vmatprep.subr.bf16.mxu0 %v872_v23 }
  0x41   :  { %875 = vmatpush3.bf16.msra.mxu0 %v874_v26 }
  0x44   :  { %348 = vmatmul.mubr.f32.vlgmr.msra.gmra.mrb[2].mxu0 %v31_v27 }
  0xf7   :  { %v677_v32 = vpop.f32.mrb[0].mxu0 }
  0xf8   :  { %v678_v34 = vpop.f32.mrb[1].mxu0 }
  0xf9   :  { %v712_v35 = vpop.f32.mrb[0].mxu1  ;;  %v679_v36 = vadd.f32 %v678_v34, %v677_v32 }
  0xfa   :  { %v713_v37 = vpop.f32.mrb[1].mxu1 }
  0xfb   :  { %v714_v38 = vadd.f32 %v713_v37, %v712_v35  ;;  %v210_v39 = vadd.f32 %v679_v36, %v637_v33 }
  0xfd   :  { %v280_v40 = vadd.f32 %v714_v38, %v210_v39  ;;  %v419_v41 = vpop.f32.mrb[2].mxu1 }
  0xfe   :  { %v765_v42 = vpop.f32.mrb[3].mxu1 }
 0x117   :  { %v747_v43 = vpop.f32.mrb[2].mxu0 }
 0x118   :  { %v748_v44 = vpop.f32.mrb[3].mxu0 }
 0x119   :  { %v749_v45 = vadd.f32 %v748_v44, %v747_v43 }
 0x11b   :  { %v350_v46 = vadd.f32 %v749_v45, %v280_v40 }
 0x11d   :  { %v420_v47 = vadd.f32 %v419_v41, %v350_v46 }
 0x11f   :  { %v424_v48 = vand.u32 2147483647, %v420_v47  ;;  %v423_v54 = vmin.f32 %v420_v47, 0.0 }
 0x121   :  { %v425_v49 = vsub.f32 0.0, %v424_v48 }
 0x123   :  { %v426_v50 = vmul.f32 1.442695, %v425_v49 }
 0x125   :  { %892 = vpow2.f32 %v426_v50 }
 0x12f   :  { %v893_v51 = vpop.eup %892 }
 0x130   :  { %v428_v52 = vadd.f32 1.0, %v893_v51 }
 0x132   :  { %894 = vlog2.f32 %v428_v52 }
 0x13c   :  { %v895_v53 = vpop.eup %894 }
 0x13d   :  { %v430_v55 = vmul.f32 0.6931472, %v895_v53 }
 0x13f   :  { %v431_v56 = vsub.f32 %v423_v54, %v430_v55 }
 0x141   :  { %771 = vmatmul.mubr.msk.f32.vlgmr.msra.gmra.mrb[4].mxu1 %vm441_vm5, %v431_v56 }
 0x142   :  { %777 = vmatprep.mubr.msk.f32.mxu1 %vm929_vm0, %v930_v60  ;;  %886 = vmatpush3.bf16.msk.msra.mxu1 %vm1300_vm4, %v884_v59 }
 0x214   :  { %v515_v62 = vpop.f32.mrb[4].mxu1 }
 0x215   :  { %v516_v63 = vadd.f32 %v639_v61, %v515_v62  ;;  %v772_v0 = vpop.f32.mrb[5].mxu1 }
 0x217   :  { %v520_v60 = vand.u32 2147483647, %v516_v63  ;;  %v519_v6 = vmin.f32 %v516_v63, 0.0 }
 0x219   :  { %v521_v1 = vsub.f32 0.0, %v520_v60 }
 0x21b   :  { %v522_v2 = vmul.f32 1.442695, %v521_v1 }
 0x21d   :  { %896 = vpow2.f32 %v522_v2 }
 0x227   :  { %v897_v3 = vpop.eup %896 }
 0x228   :  { %v524_v4 = vadd.f32 1.0, %v897_v3 }
 0x22a   :  { %898 = vlog2.f32 %v524_v4 }
 0x234   :  { %v899_v5 = vpop.eup %898 }
 0x235   :  { %v526_v7 = vmul.f32 0.6931472, %v899_v5 }
 0x237   :  { %v527_v8 = vsub.f32 %v519_v6, %v526_v7 }
 0x239   :  { %778 = vmatmul.mubr.msk.f32.vlgmr.msra.gmra.mrb[6].mxu1 %vm441_vm5, %v527_v8 }
 0x30c   :  { %v609_v10 = vpop.f32.mrb[6].mxu1 }
 0x30d   :  { %v610_v11 = vadd.f32 %v642_v9, %v609_v10  ;;  %v779_v12 = vpop.f32.mrb[7].mxu1 }
 0x30f   :  { %v614_v13 = vand.u32 2147483647, %v610_v11  ;;  %v613_v19 = vmin.f32 %v610_v11, 0.0 }
 0x311   :  { %v615_v14 = vsub.f32 0.0, %v614_v13 }
 0x313   :  { %v616_v15 = vmul.f32 1.442695, %v615_v14 }
 0x315   :  { %900 = vpow2.f32 %v616_v15 }
 0x31f   :  { %v901_v16 = vpop.eup %900 }
 0x320   :  { %v618_v17 = vadd.f32 1.0, %v901_v16 }
 0x322   :  { %902 = vlog2.f32 %v618_v17 }
 0x32c   :  { %v903_v18 = vpop.eup %902 }
 0x32d   :  { %v620_v20 = vmul.f32 0.6931472, %v903_v18 }
 0x32f   :  { %v621_v21 = vsub.f32 %v613_v19, %v620_v20 }
 0x331   :  { %622 = vst.msk [vmem:[#allocation2] sm:$0xff] %vm441_vm5, %v621_v21 }
 0x332   :  { %915 = shalt.err (!%p912_p4)
}
 0x333   :  { %s916_s16 = scalar_lea.hbm %s1348_s7, 128 }
 0x334   :  { %p917_p5 = scmp.ne.s32.totalorder %s1348_s7, %s916_s16  ;;  %p920_p6 = scmp.lt.u32.totalorder %s916_s16, %s1348_s7 }
 0x336   :  { %p922_p7 = pnand %p920_p6, %p917_p5 }
 0x338   :  { %925 = shalt.err (!%p922_p7)
}
 0x339   :  { %632 = dma.vmem_to_hbm [thread:$0]  %s630_s13, 128, %s1348_s7, [#allocation3]  }
 0x33a   :  { %926 = dma.done.wait [#allocation3], 128  }
 0x33b   :  { %927 = vsyncadd [#allocation3], 4294967168 }
 0x33c   :  { %636 = vsyncpa [#allocation3], 1 }

</bundles_post_ra>
